<compile_context>
chip_gen: v5e
topology: v5e:2x2
jax: 0.10.0
libtpu: 0.0.40
codegen_flags: <defaults>
</compile_context>

<pallas_src>
import functools

import jax
import jax.numpy as jnp
import numpy as np
from jax.experimental import pallas as pl
from jax.experimental.pallas import tpu as pltpu


def _make_kernel(residual: bool):
    def kernel(vcols_ref, hcols_ref, xh_ref,
               wv_ref, bv_ref, wh_ref, bh_ref,
               w2h_ref, b2h_ref, wres_ref, bres_ref,
               out_v_ref, out_h_ref):
        dot = functools.partial(jnp.dot, preferred_element_type=jnp.float32)

        vcols = vcols_ref[0]            # (kh*kw*C, H*W)  vertical-stack im2col
        hcols = hcols_ref[0]            # (khw*C,  H*W)   horizontal-stack im2col

        # Vertical stack conv: one fused matmul per gate half, each (C, H*W).
        hv_t = dot(wv_ref[0], vcols) + bv_ref[0]
        hv_s = dot(wv_ref[1], vcols) + bv_ref[1]

        # Horizontal stack conv (same fusion).
        hh_t = dot(wh_ref[0], hcols) + bh_ref[0]
        hh_s = dot(wh_ref[1], hcols) + bh_ref[1]

        # vert_to_horiz 1x1 conv in 2x2 block form (halves stay separate, so no
        # unaligned sublane concat/slice is needed).
        v2h_t = dot(w2h_ref[0], hv_t) + dot(w2h_ref[1], hv_s) + b2h_ref[0]
        v2h_s = dot(w2h_ref[2], hv_t) + dot(w2h_ref[3], hv_s) + b2h_ref[1]

        io_t = v2h_t + hh_t
        io_s = v2h_s + hh_s

        # Gated activations (chunk(2, dim=1): first half -> tanh, second -> sigmoid).
        out_v = jnp.tanh(hv_t) * jax.nn.sigmoid(hv_s)
        gate_h = jnp.tanh(io_t) * jax.nn.sigmoid(io_s)

        # horiz_resid 1x1 conv (+ residual).
        res = dot(wres_ref[...], gate_h) + bres_ref[...]
        if residual:
            res = res + xh_ref[0]

        out_v_ref[0] = out_v.astype(out_v_ref.dtype)
        out_h_ref[0] = res.astype(out_h_ref.dtype)

    return kernel


def gated_masked_conv2d(x_v, x_h, params, kernel_size, dim,
                        mask_type='A', residual=True):
    """x_v, x_h: NCHW float32. Returns (out_v, out_h) in NCHW."""
    B, C, H, W = x_v.shape
    assert C == dim and x_h.shape == x_v.shape
    assert H == W, "module's output slicing assumes square spatial dims"
    assert kernel_size % 2 == 1
    k = kernel_size
    pad = k // 2
    kh, kw = k // 2 + 1, k          # vertical kernel (height, width)
    khw = k // 2 + 1                # horizontal kernel width
    HW = H * W

    wv = params['wv']               # (2C, C, kh, kw)  OIHW
    wh = params['wh']               # (2C, C, 1, khw)  OIHW
    if mask_type == 'A':            # make_causal()
        wv = wv.at[:, :, -1].set(0.0)
        wh = wh.at[:, :, :, -1].set(0.0)

    # ---- im2col operands: channel-major, spatial flattened onto the lane axis.
    xvp = jnp.pad(x_v, ((0, 0), (0, 0), (pad, pad), (pad, pad)))
    xhp = jnp.pad(x_h, ((0, 0), (0, 0), (0, 0), (pad, pad)))
    v_cols = jnp.concatenate(
        [xvp[:, :, di:di + H, dj:dj + W] for di in range(kh) for dj in range(kw)],
        axis=1).reshape(B, kh * kw * C, HW)            # (B, 6C, H*W)
    h_cols = jnp.concatenate(
        [xhp[:, :, :, dj:dj + W] for dj in range(khw)],
        axis=1).reshape(B, khw * C, HW)                # (B, 2C, H*W)
    xh_flat = x_h.reshape(B, C, HW)                    # residual term

    # ---- weights: fold the conv taps into the contraction axis, split halves.
    wv_mat = jnp.transpose(wv, (0, 2, 3, 1)).reshape(2 * C, kh * kw * C)
    wh_mat = jnp.transpose(wh, (0, 2, 3, 1)).reshape(2 * C, khw * C)
    wv2 = jnp.stack([wv_mat[:C], wv_mat[C:]])          # (2, C, 6C) tanh/sigmoid
    wh2 = jnp.stack([wh_mat[:C], wh_mat[C:]])          # (2, C, 2C)

    w2h_full = params['wv2h'][:, :, 0, 0]              # (2C, 2C)
    w2h = jnp.stack([w2h_full[:C, :C], w2h_full[:C, C:],
                     w2h_full[C:, :C], w2h_full[C:, C:]])   # (4, C, C) tt,ts,st,ss
    wres = params['wres'][:, :, 0, 0]                  # (C, C)

    bv2 = jnp.stack([params['bv'][:C], params['bv'][C:]])[..., None]     # (2, C, 1)
    bh2 = jnp.stack([params['bh'][:C], params['bh'][C:]])[..., None]
    b2h = jnp.stack([params['bv2h'][:C], params['bv2h'][C:]])[..., None]
    bres = params['bres'][:, None]                     # (C, 1)

    kern = _make_kernel(residual)

    batch_block = lambda shape: pl.BlockSpec(
        (1,) + shape[1:], lambda b: (b,) + (0,) * (len(shape) - 1))
    const_block = lambda shape: pl.BlockSpec(
        shape, lambda b: (0,) * len(shape))

    in_specs = [
        batch_block(v_cols.shape),
        batch_block(h_cols.shape),
        batch_block(xh_flat.shape),
        const_block(wv2.shape), const_block(bv2.shape),
        const_block(wh2.shape), const_block(bh2.shape),
        const_block(w2h.shape), const_block(b2h.shape),
        const_block(wres.shape), const_block(bres.shape),
    ]
    out_specs = (
        pl.BlockSpec((1, C, HW), lambda b: (b, 0, 0)),
        pl.BlockSpec((1, C, HW), lambda b: (b, 0, 0)),
    )
    out_shape = (
        jax.ShapeDtypeStruct((B, C, HW), jnp.float32),
        jax.ShapeDtypeStruct((B, C, HW), jnp.float32),
    )

    out_v, out_h = pl.pallas_call(
        kern,
        out_shape=out_shape,
        grid=(B,),
        in_specs=in_specs,
        out_specs=out_specs,
        compiler_params=pltpu.CompilerParams(
            dimension_semantics=("parallel",)),   # megacore sharding on v7x
    )(v_cols, h_cols, xh_flat, wv2, bv2, wh2, bh2, w2h, b2h, wres, bres)

    # (B, C, H*W) -> NCHW is a free contiguous reshape (no transpose).
    return out_v.reshape(B, C, H, W), out_h.reshape(B, C, H, W)


# ----------------------------- pure-JAX reference -----------------------------
def _conv_ref(x, w, b, pad_hw):
    y = jax.lax.conv_general_dilated(
        x, w, window_strides=(1, 1),
        padding=[(pad_hw[0], pad_hw[0]), (pad_hw[1], pad_hw[1])],
        dimension_numbers=('NCHW', 'OIHW', 'NCHW'),
        precision=jax.lax.Precision.HIGHEST)
    return y + b[None, :, None, None]


def ref_forward(x_v, x_h, params, kernel_size, dim, mask_type='A', residual=True):
    k = kernel_size
    wv, bv = params['wv'], params['bv']
    wh, bh = params['wh'], params['bh']
    if mask_type == 'A':
        wv = wv.at[:, :, -1].set(0.0)
        wh = wh.at[:, :, :, -1].set(0.0)
    h_vert = _conv_ref(x_v, wv, bv, (k // 2, k // 2))
    h_vert = h_vert[:, :, :x_v.shape[-1], :]
    h_horiz = _conv_ref(x_h, wh, bh, (0, k // 2))
    h_horiz = h_horiz[:, :, :, :x_h.shape[-2]]
    v2h = _conv_ref(h_vert, params['wv2h'], params['bv2h'], (0, 0))
    io_v = h_vert
    io_h = v2h + h_horiz
    gate = lambda z: jnp.tanh(z[:, :dim]) * jax.nn.sigmoid(z[:, dim:])
    out_v = gate(io_v)
    gate_h = gate(io_h)
    out_h = _conv_ref(gate_h, params['wres'], params['bres'], (0, 0))
    if residual:
        out_h = out_h + x_h
    return out_v, out_h


if __name__ == "__main__":
    B, dim, H, W = 2, 4, 16, 16
    kernel_size = 3
    C2 = 2 * dim
    khv = kernel_size // 2 + 1   # vertical kernel height
    khh = kernel_size // 2 + 1   # horizontal kernel width

    key = jax.random.PRNGKey(0)
    ks = jax.random.split(key, 10)

    # Inputs/params are rounded to bf16-representable f32 so the fused conv
    # matmuls are exact even at default (single-pass) MXU precision.
    def rnd(k, shape, scale=0.1):
        v = jax.random.normal(k, shape, jnp.float32) * scale
        return v.astype(jnp.bfloat16).astype(jnp.float32)

    params = {
        'wv':   rnd(ks[0], (C2, dim, khv, kernel_size)),
        'bv':   rnd(ks[1], (C2,)),
        'wh':   rnd(ks[2], (C2, dim, 1, khh)),
        'bh':   rnd(ks[3], (C2,)),
        'wv2h': rnd(ks[4], (C2, C2, 1, 1)),
        'bv2h': rnd(ks[5], (C2,)),
        'wres': rnd(ks[6], (dim, dim, 1, 1)),
        'bres': rnd(ks[7], (dim,)),
    }
    x_v = rnd(ks[8], (B, dim, H, W), 1.0)
    x_h = rnd(ks[9], (B, dim, H, W), 1.0)

    fwd = jax.jit(functools.partial(
        gated_masked_conv2d, kernel_size=kernel_size, dim=dim,
        mask_type='A', residual=True))
    out_v, out_h = fwd(x_v, x_h, params)
    jax.block_until_ready((out_v, out_h))

    ref_v, ref_h = ref_forward(
        x_v, x_h, params, kernel_size, dim, mask_type='A', residual=True)
    # Kernel matmuls run at default MXU precision (per perf review); the chained
    # 1x1 dots see bf16 rounding of intermediate activations, bounded well below
    # 2e-2 vs the HIGHEST-precision reference.
    np.testing.assert_allclose(np.asarray(out_v), np.asarray(ref_v),
                               rtol=2e-2, atol=2e-2)
    np.testing.assert_allclose(np.asarray(out_h), np.asarray(ref_h),
                               rtol=2e-2, atol=2e-2)

    print("KERNEL_OK")
</pallas_src>

<mosaic_0001>
module attributes {stable_mosaic.version = 11 : i64} {
  func.func @kernel(%arg0: i32, %arg1: memref<1x24x256xf32, #tpu.memory_space<vmem>>, %arg2: memref<1x8x256xf32, #tpu.memory_space<vmem>>, %arg3: memref<1x4x256xf32, #tpu.memory_space<vmem>>, %arg4: memref<2x4x24xf32, #tpu.memory_space<vmem>>, %arg5: memref<2x4x1xf32, #tpu.memory_space<vmem>>, %arg6: memref<2x4x8xf32, #tpu.memory_space<vmem>>, %arg7: memref<2x4x1xf32, #tpu.memory_space<vmem>>, %arg8: memref<4x4x4xf32, #tpu.memory_space<vmem>>, %arg9: memref<2x4x1xf32, #tpu.memory_space<vmem>>, %arg10: memref<4x4xf32, #tpu.memory_space<vmem>>, %arg11: memref<4x1xf32, #tpu.memory_space<vmem>>, %arg12: memref<1x4x256xf32, #tpu.memory_space<vmem>>, %arg13: memref<1x4x256xf32, #tpu.memory_space<vmem>>) attributes {dimension_semantics = [#tpu.dimension_semantics<parallel>], iteration_bounds = array<i64: 2>, scalar_prefetch = 0 : i64, scratch_operands = 0 : i64, tpu.core_type = #tpu.core_type<tc>, window_params = [{transform_indices = @transform_0, window_bounds = array<i64: 1, 24, 256>}, {transform_indices = @transform_1, window_bounds = array<i64: 1, 8, 256>}, {transform_indices = @transform_2, window_bounds = array<i64: 1, 4, 256>}, {pipeline_mode = #tpu.pipeline_mode<synchronous>, transform_indices = @transform_3, window_bounds = array<i64: 2, 4, 24>}, {pipeline_mode = #tpu.pipeline_mode<synchronous>, transform_indices = @transform_4, window_bounds = array<i64: 2, 4, 1>}, {pipeline_mode = #tpu.pipeline_mode<synchronous>, transform_indices = @transform_5, window_bounds = array<i64: 2, 4, 8>}, {pipeline_mode = #tpu.pipeline_mode<synchronous>, transform_indices = @transform_6, window_bounds = array<i64: 2, 4, 1>}, {pipeline_mode = #tpu.pipeline_mode<synchronous>, transform_indices = @transform_7, window_bounds = array<i64: 4, 4, 4>}, {pipeline_mode = #tpu.pipeline_mode<synchronous>, transform_indices = @transform_8, window_bounds = array<i64: 2, 4, 1>}, {pipeline_mode = #tpu.pipeline_mode<synchronous>, transform_indices = @transform_9, window_bounds = array<i64: 4, 4>}, {pipeline_mode = #tpu.pipeline_mode<synchronous>, transform_indices = @transform_10, window_bounds = array<i64: 4, 1>}, {transform_indices = @transform_11, window_bounds = array<i64: 1, 4, 256>}, {transform_indices = @transform_12, window_bounds = array<i64: 1, 4, 256>}]} {
    %c0 = arith.constant 0 : index
    %c0_0 = arith.constant 0 : index
    %c0_1 = arith.constant 0 : index
    %0 = vector.load %arg1[%c0, %c0_0, %c0_1] : memref<1x24x256xf32, #tpu.memory_space<vmem>>, vector<1x24x256xf32>
    %1 = vector.shape_cast %0 : vector<1x24x256xf32> to vector<24x256xf32>
    %c0_2 = arith.constant 0 : index
    %c0_3 = arith.constant 0 : index
    %c0_4 = arith.constant 0 : index
    %2 = vector.load %arg2[%c0_2, %c0_3, %c0_4] : memref<1x8x256xf32, #tpu.memory_space<vmem>>, vector<1x8x256xf32>
    %3 = vector.shape_cast %2 : vector<1x8x256xf32> to vector<8x256xf32>
    %c0_5 = arith.constant 0 : index
    %c0_6 = arith.constant 0 : index
    %c0_7 = arith.constant 0 : index
    %4 = vector.load %arg4[%c0_5, %c0_6, %c0_7] : memref<2x4x24xf32, #tpu.memory_space<vmem>>, vector<1x4x24xf32>
    %5 = vector.shape_cast %4 : vector<1x4x24xf32> to vector<4x24xf32>
    %cst = arith.constant dense<0.000000e+00> : vector<4x256xf32>
    %6 = tpu.matmul %5, %1, %cst {dimension_numbers = #tpu.dot_dimension_numbers<[1], [0], [0], [1], [0, 0, 1, 1], [], []>} : vector<4x24xf32>, vector<24x256xf32>, vector<4x256xf32> -> vector<4x256xf32>
    %c0_8 = arith.constant 0 : index
    %c0_9 = arith.constant 0 : index
    %c0_10 = arith.constant 0 : index
    %7 = vector.load %arg5[%c0_8, %c0_9, %c0_10] : memref<2x4x1xf32, #tpu.memory_space<vmem>>, vector<1x4x1xf32>
    %8 = vector.shape_cast %7 : vector<1x4x1xf32> to vector<4x1xf32>
    %9 = vector.broadcast %8 : vector<4x1xf32> to vector<4x256xf32>
    %10 = arith.addf %6, %9 : vector<4x256xf32>
    %c1 = arith.constant 1 : index
    %c0_11 = arith.constant 0 : index
    %c0_12 = arith.constant 0 : index
    %11 = vector.load %arg4[%c1, %c0_11, %c0_12] : memref<2x4x24xf32, #tpu.memory_space<vmem>>, vector<1x4x24xf32>
    %12 = vector.shape_cast %11 : vector<1x4x24xf32> to vector<4x24xf32>
    %cst_13 = arith.constant dense<0.000000e+00> : vector<4x256xf32>
    %13 = tpu.matmul %12, %1, %cst_13 {dimension_numbers = #tpu.dot_dimension_numbers<[1], [0], [0], [1], [0, 0, 1, 1], [], []>} : vector<4x24xf32>, vector<24x256xf32>, vector<4x256xf32> -> vector<4x256xf32>
    %c1_14 = arith.constant 1 : index
    %c0_15 = arith.constant 0 : index
    %c0_16 = arith.constant 0 : index
    %14 = vector.load %arg5[%c1_14, %c0_15, %c0_16] : memref<2x4x1xf32, #tpu.memory_space<vmem>>, vector<1x4x1xf32>
    %15 = vector.shape_cast %14 : vector<1x4x1xf32> to vector<4x1xf32>
    %16 = vector.broadcast %15 : vector<4x1xf32> to vector<4x256xf32>
    %17 = arith.addf %13, %16 : vector<4x256xf32>
    %c0_17 = arith.constant 0 : index
    %c0_18 = arith.constant 0 : index
    %c0_19 = arith.constant 0 : index
    %18 = vector.load %arg6[%c0_17, %c0_18, %c0_19] : memref<2x4x8xf32, #tpu.memory_space<vmem>>, vector<1x4x8xf32>
    %19 = vector.shape_cast %18 : vector<1x4x8xf32> to vector<4x8xf32>
    %cst_20 = arith.constant dense<0.000000e+00> : vector<4x256xf32>
    %20 = tpu.matmul %19, %3, %cst_20 {dimension_numbers = #tpu.dot_dimension_numbers<[1], [0], [0], [1], [0, 0, 1, 1], [], []>} : vector<4x8xf32>, vector<8x256xf32>, vector<4x256xf32> -> vector<4x256xf32>
    %c0_21 = arith.constant 0 : index
    %c0_22 = arith.constant 0 : index
    %c0_23 = arith.constant 0 : index
    %21 = vector.load %arg7[%c0_21, %c0_22, %c0_23] : memref<2x4x1xf32, #tpu.memory_space<vmem>>, vector<1x4x1xf32>
    %22 = vector.shape_cast %21 : vector<1x4x1xf32> to vector<4x1xf32>
    %23 = vector.broadcast %22 : vector<4x1xf32> to vector<4x256xf32>
    %24 = arith.addf %20, %23 : vector<4x256xf32>
    %c1_24 = arith.constant 1 : index
    %c0_25 = arith.constant 0 : index
    %c0_26 = arith.constant 0 : index
    %25 = vector.load %arg6[%c1_24, %c0_25, %c0_26] : memref<2x4x8xf32, #tpu.memory_space<vmem>>, vector<1x4x8xf32>
    %26 = vector.shape_cast %25 : vector<1x4x8xf32> to vector<4x8xf32>
    %cst_27 = arith.constant dense<0.000000e+00> : vector<4x256xf32>
    %27 = tpu.matmul %26, %3, %cst_27 {dimension_numbers = #tpu.dot_dimension_numbers<[1], [0], [0], [1], [0, 0, 1, 1], [], []>} : vector<4x8xf32>, vector<8x256xf32>, vector<4x256xf32> -> vector<4x256xf32>
    %c1_28 = arith.constant 1 : index
    %c0_29 = arith.constant 0 : index
    %c0_30 = arith.constant 0 : index
    %28 = vector.load %arg7[%c1_28, %c0_29, %c0_30] : memref<2x4x1xf32, #tpu.memory_space<vmem>>, vector<1x4x1xf32>
    %29 = vector.shape_cast %28 : vector<1x4x1xf32> to vector<4x1xf32>
    %30 = vector.broadcast %29 : vector<4x1xf32> to vector<4x256xf32>
    %31 = arith.addf %27, %30 : vector<4x256xf32>
    %c0_31 = arith.constant 0 : index
    %c0_32 = arith.constant 0 : index
    %c0_33 = arith.constant 0 : index
    %32 = vector.load %arg8[%c0_31, %c0_32, %c0_33] : memref<4x4x4xf32, #tpu.memory_space<vmem>>, vector<1x4x4xf32>
    %33 = vector.shape_cast %32 : vector<1x4x4xf32> to vector<4x4xf32>
    %cst_34 = arith.constant dense<0.000000e+00> : vector<4x256xf32>
    %34 = tpu.matmul %33, %10, %cst_34 {dimension_numbers = #tpu.dot_dimension_numbers<[1], [0], [0], [1], [0, 0, 1, 1], [], []>} : vector<4x4xf32>, vector<4x256xf32>, vector<4x256xf32> -> vector<4x256xf32>
    %c1_35 = arith.constant 1 : index
    %c0_36 = arith.constant 0 : index
    %c0_37 = arith.constant 0 : index
    %35 = vector.load %arg8[%c1_35, %c0_36, %c0_37] : memref<4x4x4xf32, #tpu.memory_space<vmem>>, vector<1x4x4xf32>
    %36 = vector.shape_cast %35 : vector<1x4x4xf32> to vector<4x4xf32>
    %cst_38 = arith.constant dense<0.000000e+00> : vector<4x256xf32>
    %37 = tpu.matmul %36, %17, %cst_38 {dimension_numbers = #tpu.dot_dimension_numbers<[1], [0], [0], [1], [0, 0, 1, 1], [], []>} : vector<4x4xf32>, vector<4x256xf32>, vector<4x256xf32> -> vector<4x256xf32>
    %38 = arith.addf %34, %37 : vector<4x256xf32>
    %c0_39 = arith.constant 0 : index
    %c0_40 = arith.constant 0 : index
    %c0_41 = arith.constant 0 : index
    %39 = vector.load %arg9[%c0_39, %c0_40, %c0_41] : memref<2x4x1xf32, #tpu.memory_space<vmem>>, vector<1x4x1xf32>
    %40 = vector.shape_cast %39 : vector<1x4x1xf32> to vector<4x1xf32>
    %41 = vector.broadcast %40 : vector<4x1xf32> to vector<4x256xf32>
    %42 = arith.addf %38, %41 : vector<4x256xf32>
    %c2 = arith.constant 2 : index
    %c0_42 = arith.constant 0 : index
    %c0_43 = arith.constant 0 : index
    %43 = vector.load %arg8[%c2, %c0_42, %c0_43] : memref<4x4x4xf32, #tpu.memory_space<vmem>>, vector<1x4x4xf32>
    %44 = vector.shape_cast %43 : vector<1x4x4xf32> to vector<4x4xf32>
    %cst_44 = arith.constant dense<0.000000e+00> : vector<4x256xf32>
    %45 = tpu.matmul %44, %10, %cst_44 {dimension_numbers = #tpu.dot_dimension_numbers<[1], [0], [0], [1], [0, 0, 1, 1], [], []>} : vector<4x4xf32>, vector<4x256xf32>, vector<4x256xf32> -> vector<4x256xf32>
    %c3 = arith.constant 3 : index
    %c0_45 = arith.constant 0 : index
    %c0_46 = arith.constant 0 : index
    %46 = vector.load %arg8[%c3, %c0_45, %c0_46] : memref<4x4x4xf32, #tpu.memory_space<vmem>>, vector<1x4x4xf32>
    %47 = vector.shape_cast %46 : vector<1x4x4xf32> to vector<4x4xf32>
    %cst_47 = arith.constant dense<0.000000e+00> : vector<4x256xf32>
    %48 = tpu.matmul %47, %17, %cst_47 {dimension_numbers = #tpu.dot_dimension_numbers<[1], [0], [0], [1], [0, 0, 1, 1], [], []>} : vector<4x4xf32>, vector<4x256xf32>, vector<4x256xf32> -> vector<4x256xf32>
    %49 = arith.addf %45, %48 : vector<4x256xf32>
    %c1_48 = arith.constant 1 : index
    %c0_49 = arith.constant 0 : index
    %c0_50 = arith.constant 0 : index
    %50 = vector.load %arg9[%c1_48, %c0_49, %c0_50] : memref<2x4x1xf32, #tpu.memory_space<vmem>>, vector<1x4x1xf32>
    %51 = vector.shape_cast %50 : vector<1x4x1xf32> to vector<4x1xf32>
    %52 = vector.broadcast %51 : vector<4x1xf32> to vector<4x256xf32>
    %53 = arith.addf %49, %52 : vector<4x256xf32>
    %54 = arith.addf %42, %24 : vector<4x256xf32>
    %55 = arith.addf %53, %31 : vector<4x256xf32>
    %56 = math.tanh %10 : vector<4x256xf32>
    %57 = arith.negf %17 : vector<4x256xf32>
    %58 = math.exp %57 : vector<4x256xf32>
    %cst_51 = arith.constant 1.000000e+00 : f32
    %59 = vector.broadcast %cst_51 : f32 to vector<4x256xf32>
    %60 = arith.addf %59, %58 : vector<4x256xf32>
    %61 = arith.divf %59, %60 : vector<4x256xf32>
    %62 = arith.mulf %56, %61 : vector<4x256xf32>
    %63 = math.tanh %54 : vector<4x256xf32>
    %64 = arith.negf %55 : vector<4x256xf32>
    %65 = math.exp %64 : vector<4x256xf32>
    %cst_52 = arith.constant 1.000000e+00 : f32
    %66 = vector.broadcast %cst_52 : f32 to vector<4x256xf32>
    %67 = arith.addf %66, %65 : vector<4x256xf32>
    %68 = arith.divf %66, %67 : vector<4x256xf32>
    %69 = arith.mulf %63, %68 : vector<4x256xf32>
    %c0_53 = arith.constant 0 : index
    %c0_54 = arith.constant 0 : index
    %70 = vector.load %arg10[%c0_53, %c0_54] : memref<4x4xf32, #tpu.memory_space<vmem>>, vector<4x4xf32>
    %cst_55 = arith.constant dense<0.000000e+00> : vector<4x256xf32>
    %71 = tpu.matmul %70, %69, %cst_55 {dimension_numbers = #tpu.dot_dimension_numbers<[1], [0], [0], [1], [0, 0, 1, 1], [], []>} : vector<4x4xf32>, vector<4x256xf32>, vector<4x256xf32> -> vector<4x256xf32>
    %c0_56 = arith.constant 0 : index
    %c0_57 = arith.constant 0 : index
    %72 = vector.load %arg11[%c0_56, %c0_57] : memref<4x1xf32, #tpu.memory_space<vmem>>, vector<4x1xf32>
    %73 = vector.broadcast %72 : vector<4x1xf32> to vector<4x256xf32>
    %74 = arith.addf %71, %73 : vector<4x256xf32>
    %c0_58 = arith.constant 0 : index
    %c0_59 = arith.constant 0 : index
    %c0_60 = arith.constant 0 : index
    %75 = vector.load %arg3[%c0_58, %c0_59, %c0_60] : memref<1x4x256xf32, #tpu.memory_space<vmem>>, vector<1x4x256xf32>
    %76 = vector.shape_cast %75 : vector<1x4x256xf32> to vector<4x256xf32>
    %77 = arith.addf %74, %76 : vector<4x256xf32>
    %c0_61 = arith.constant 0 : index
    %c0_62 = arith.constant 0 : index
    %c0_63 = arith.constant 0 : index
    %78 = vector.load %arg12[%c0_61, %c0_62, %c0_63] : memref<1x4x256xf32, #tpu.memory_space<vmem>>, vector<1x4x256xf32>
    %79 = vector.shape_cast %78 : vector<1x4x256xf32> to vector<4x256xf32>
    %80 = vector.shape_cast %62 : vector<4x256xf32> to vector<1x4x256xf32>
    tpu.vector_store %arg12[%c0_61, %c0_62, %c0_63], %80 {strides = array<i32>} : memref<1x4x256xf32, #tpu.memory_space<vmem>>, vector<1x4x256xf32>,
    %c0_64 = arith.constant 0 : index
    %c0_65 = arith.constant 0 : index
    %c0_66 = arith.constant 0 : index
    %81 = vector.load %arg13[%c0_64, %c0_65, %c0_66] : memref<1x4x256xf32, #tpu.memory_space<vmem>>, vector<1x4x256xf32>
    %82 = vector.shape_cast %81 : vector<1x4x256xf32> to vector<4x256xf32>
    %83 = vector.shape_cast %77 : vector<4x256xf32> to vector<1x4x256xf32>
    tpu.vector_store %arg13[%c0_64, %c0_65, %c0_66], %83 {strides = array<i32>} : memref<1x4x256xf32, #tpu.memory_space<vmem>>, vector<1x4x256xf32>,
    return
  }
  func.func @transform_0(%arg0: i32) -> (i32, i32, i32) {
    %c0_i32 = arith.constant 0 : i32
    %c0_i32_0 = arith.constant 0 : i32
    %c0_i32_1 = arith.constant 0 : i32
    return %arg0, %c0_i32, %c0_i32_0 : i32, i32, i32
  }
  func.func @transform_1(%arg0: i32) -> (i32, i32, i32) {
    %c0_i32 = arith.constant 0 : i32
    %c0_i32_0 = arith.constant 0 : i32
    %c0_i32_1 = arith.constant 0 : i32
    return %arg0, %c0_i32, %c0_i32_0 : i32, i32, i32
  }
  func.func @transform_2(%arg0: i32) -> (i32, i32, i32) {
    %c0_i32 = arith.constant 0 : i32
    %c0_i32_0 = arith.constant 0 : i32
    %c0_i32_1 = arith.constant 0 : i32
    return %arg0, %c0_i32, %c0_i32_0 : i32, i32, i32
  }
  func.func @transform_3(%arg0: i32) -> (i32, i32, i32) {
    %c0_i32 = arith.constant 0 : i32
    %c0_i32_0 = arith.constant 0 : i32
    %c0_i32_1 = arith.constant 0 : i32
    %c0_i32_2 = arith.constant 0 : i32
    return %c0_i32, %c0_i32_0, %c0_i32_1 : i32, i32, i32
  }
  func.func @transform_4(%arg0: i32) -> (i32, i32, i32) {
    %c0_i32 = arith.constant 0 : i32
    %c0_i32_0 = arith.constant 0 : i32
    %c0_i32_1 = arith.constant 0 : i32
    %c0_i32_2 = arith.constant 0 : i32
    return %c0_i32, %c0_i32_0, %c0_i32_1 : i32, i32, i32
  }
  func.func @transform_5(%arg0: i32) -> (i32, i32, i32) {
    %c0_i32 = arith.constant 0 : i32
    %c0_i32_0 = arith.constant 0 : i32
    %c0_i32_1 = arith.constant 0 : i32
    %c0_i32_2 = arith.constant 0 : i32
    return %c0_i32, %c0_i32_0, %c0_i32_1 : i32, i32, i32
  }
  func.func @transform_6(%arg0: i32) -> (i32, i32, i32) {
    %c0_i32 = arith.constant 0 : i32
    %c0_i32_0 = arith.constant 0 : i32
    %c0_i32_1 = arith.constant 0 : i32
    %c0_i32_2 = arith.constant 0 : i32
    return %c0_i32, %c0_i32_0, %c0_i32_1 : i32, i32, i32
  }
  func.func @transform_7(%arg0: i32) -> (i32, i32, i32) {
    %c0_i32 = arith.constant 0 : i32
    %c0_i32_0 = arith.constant 0 : i32
    %c0_i32_1 = arith.constant 0 : i32
    %c0_i32_2 = arith.constant 0 : i32
    return %c0_i32, %c0_i32_0, %c0_i32_1 : i32, i32, i32
  }
  func.func @transform_8(%arg0: i32) -> (i32, i32, i32) {
    %c0_i32 = arith.constant 0 : i32
    %c0_i32_0 = arith.constant 0 : i32
    %c0_i32_1 = arith.constant 0 : i32
    %c0_i32_2 = arith.constant 0 : i32
    return %c0_i32, %c0_i32_0, %c0_i32_1 : i32, i32, i32
  }
  func.func @transform_9(%arg0: i32) -> (i32, i32) {
    %c0_i32 = arith.constant 0 : i32
    %c0_i32_0 = arith.constant 0 : i32
    %c0_i32_1 = arith.constant 0 : i32
    return %c0_i32, %c0_i32_0 : i32, i32
  }
  func.func @transform_10(%arg0: i32) -> (i32, i32) {
    %c0_i32 = arith.constant 0 : i32
    %c0_i32_0 = arith.constant 0 : i32
    %c0_i32_1 = arith.constant 0 : i32
    return %c0_i32, %c0_i32_0 : i32, i32
  }
  func.func @transform_11(%arg0: i32) -> (i32, i32, i32) {
    %c0_i32 = arith.constant 0 : i32
    %c0_i32_0 = arith.constant 0 : i32
    %c0_i32_1 = arith.constant 0 : i32
    return %arg0, %c0_i32, %c0_i32_0 : i32, i32, i32
  }
  func.func @transform_12(%arg0: i32) -> (i32, i32, i32) {
    %c0_i32 = arith.constant 0 : i32
    %c0_i32_0 = arith.constant 0 : i32
    %c0_i32_1 = arith.constant 0 : i32
    return %arg0, %c0_i32, %c0_i32_0 : i32, i32, i32
  }
}

</mosaic_0001>

<bundles_post_ra>
// kernel: gated_masked_conv2d.1
= control target key start
LH: loop header
LB: loop body
LE: loop exit
PB: predicated region body
PF: predicated region fallthrough
CT: control target
= control target key end

     0   :  { %s1339_s21 = smov 0   ;;  %s1445_s0 = inlined_call_operand.vmem [shape: f32[2,24,256], index: 0, kind: input, shape index: {}]   ;;  %s1446_s1 = inlined_call_operand.vmem [shape: f32[2,8,256], index: 1, kind: input, shape index: {}]   ;;  %s1447_s2 = inlined_call_operand.vmem [shape: f32[2,4,256], index: 2, kind: input, shape index: {}]   ;;  %s1448_s3 = inlined_call_operand.vmem [shape: f32[2,4,24], index: 3, kind: input, shape index: {}]   ;;  %s1449_s4 = inlined_call_operand.vmem [shape: f32[2,4,1], index: 4, kind: input, shape index: {}]   ;;  %s1450_s5 = inlined_call_operand.vmem [shape: f32[2,4,8], index: 5, kind: input, shape index: {}]   ;;  %s1451_s6 = inlined_call_operand.vmem [shape: f32[2,4,1], index: 6, kind: input, shape index: {}]   ;;  %s1452_s7 = inlined_call_operand.vmem [shape: f32[4,4,4], index: 7, kind: input, shape index: {}]   ;;  %s1453_s8 = inlined_call_operand.vmem [shape: f32[2,4,1], index: 8, kind: input, shape index: {}]   ;;  %s1454_s9 = inlined_call_operand.vmem [shape: f32[4,4], index: 9, kind: input, shape index: {}]   ;;  %s1455_s10 = inlined_call_operand.vmem [shape: f32[4,1], index: 10, kind: input, shape index: {}]   ;;  %s1456_s11 = inlined_call_operand.vmem [shape: f32[2,4,256], index: 11, kind: output, shape index: {0}]   ;;  %s1457_s12 = inlined_call_operand.vmem [shape: f32[2,4,256], index: 12, kind: output, shape index: {1}]  }
   0x1 LB: > { %s1168_s22 = sadd.s32 4294967295, %s1271_s21   ;;  %p1172_p0 = scmp.ge.s32.totalorder %s1271_s21, 1  ;;  %s1271_s21 = sphi %s1339_s21, %s23_s21  }
   0x2   : > { %p385_p1 = scmp.lt.s32.totalorder %s1271_s21, 3 }
   0x4   : > { %p386_p2 = pnand %p1172_p0, %p385_p1 }
   0x5   : > { %p442_p3 = scmp.lt.s32.totalorder (!%p386_p2), %s1168_s22, 1 }
   0x6   : > { %389 = sbr.rel (%p386_p2) target bundleno = 465 (0x1d1), region = 64 }
   0xb   : > { %v476_v0 = vld [vmem:[%s1449_s4] sm:$0xf]  ;;  %v1273_v1 = vmov 0   ;;  %s1459_s22 = smov (!%p442_p3, %s1168_s22), 1  ;;  %vm482_vm0 = vcmask 195584   ;;  %vm585_vm1 = vcmask 64512  }
   0xc   : > { %1238 = vset.pattern.permute.xlu0 %v1273_v1  ;;  %1239 = vset.pattern.permute.xlu1 %v1273_v1  ;;  %s1228_s25 = smul.u32 48, %s1459_s22  ;;  %s1354_s26 = sshll.u32 %s1459_s22, 3  ;;  %v475_v9 = vld [vmem:[%s1448_s3] sm:$0xf]  ;;  %v1184_v10 = vld [vmem:[%s1448_s3 + $0x4] sm:$0xf] }
   0xd   : > { %479 = vperm.xlu0 %1238, %v476_v0   ;;  %1240 = vset.pattern.permute.xlu2 %v1273_v1  ;;  %s456_s29 = scalar_lea.vmem %s1447_s2, %s1354_s26  ;;  %v1185_v11 = vld [vmem:[%s1449_s4 + $0x4] sm:$0xf]  ;;  %v980_v12 = vld [vmem:[%s1455_s10] sm:$0xf]  ;;  %vm688_vm2 = vcmask 1043456   ;;  %vm684_vm3 = vcmask 31744   ;;  %s461_s17 = scalar_lea.vmem %s1456_s11, %s1354_s26 }
   0xe   : > { %s446_s14 = scalar_lea.vmem %s1445_s0, %s1228_s25  ;;  %v1035_v2 = vld [vmem:[%s456_s29] sm:$0xff]  ;;  %s1224_s25 = sshll.u32 %s1459_s22, 4  ;;  %v1203_v34 = vld [vmem:[%s1452_s7 + $0x8] sm:$0xf]  ;;  %v1204_v36 = vld [vmem:[%s1452_s7 + $0xc] sm:$0xf] }
   0xf   : > { %v471_v3 = vld [vmem:[%s446_s14 + $0x20] sm:$0xff]  ;;  %1037 = vst [vmem:[#allocation1] ss:$2 sm:$0xff] %v1035_v2  ;;  %v472_v4 = vld [vmem:[%s446_s14 + $0x28] sm:$0xff]  ;;  %v469_v5 = vld [vmem:[%s446_s14 + $0x10] sm:$0xff]  ;;  %s451_s29 = scalar_lea.vmem %s1446_s1, %s1224_s25  ;;  %s466_s24 = scalar_lea.vmem %s1457_s12, %s1354_s26 }
  0x10   : > { %499 = vmatpush.msra.mxu0 %v471_v3  ;;  %519 = vmatpush.msra.mxu1 %v472_v4  ;;  %v470_v6 = vld [vmem:[%s446_s14 + $0x18] sm:$0xff]  ;;  %v467_v7 = vld [vmem:[%s446_s14] sm:$0xff]  ;;  %v468_v8 = vld [vmem:[%s446_s14 + $0x8] sm:$0xff] }
  0x11   : > { %551 = vmatpush.msra.mxu2 %v471_v3  ;;  %571 = vmatpush.msra.mxu3 %v472_v4  ;;  %v473_v13 = vld [vmem:[%s451_s29] sm:$0xff]  ;;  %v474_v14 = vld [vmem:[%s451_s29 + $0x8] sm:$0xff] }
  0x12   : > { %500 = vmatpush.msra.mxu0 %v469_v5  ;;  %520 = vmatpush.msra.mxu1 %v470_v6  ;;  %v1190_v15 = vld [vmem:[%s1450_s5 + $0x4] sm:$0xf]  ;;  %v578_v16 = vld [vmem:[%s1450_s5] sm:$0xf] }
  0x13   : > { %552 = vmatpush.msra.mxu2 %v469_v5  ;;  %572 = vmatpush.msra.mxu3 %v470_v6  ;;  %v1191_v17 = vld [vmem:[%s1451_s6 + $0x4] sm:$0xf]  ;;  %v681_v24 = vld [vmem:[%s1452_s7] sm:$0xf] }
  0x14   : > { %501 = vmatpush.msra.mxu0 %v467_v7  ;;  %521 = vmatpush.msra.mxu1 %v468_v8  ;;  %v1213_v18 = vld [vmem:[%s1453_s8 + $0x4] sm:$0xf]  ;;  %v579_v26 = vld [vmem:[%s1451_s6] sm:$0xf] }
  0x15   : > { %553 = vmatpush.msra.mxu2 %v467_v7  ;;  %573 = vmatpush.msra.mxu3 %v468_v8  ;;  %v1194_v31 = vld [vmem:[%s1452_s7 + $0x4] sm:$0xf]  ;;  %v784_v35 = vld [vmem:[%s1453_s8] sm:$0xf] }
  0x16   : > { %1182 = vmatmul.msk.f32.vlgmr.msra.gmra.mxu0 %vm482_vm0, %v475_v9  ;;  %1183 = vmatmul.msk.f32.vlgmr.msra.gmra.mxu1 %vm482_vm0, %v475_v9 }
  0x17   : > { %1186 = vmatmul.msk.f32.vlgmr.msra.gmra.mxu2 %vm482_vm0, %v1184_v10  ;;  %1187 = vmatmul.msk.f32.vlgmr.msra.gmra.mxu3 %vm482_vm0, %v1184_v10 }
  0x18   : > { %532 = vperm.xlu0 %1238, %v1185_v11   ;;  %656 = vmatpush.msrb.mxu2 %v473_v13 }
  0x19   : > { %676 = vmatpush.msrb.mxu3 %v474_v14  ;;  %604 = vmatpush.msrb.mxu0 %v473_v13 }
  0x1a   : > { %624 = vmatpush.msrb.mxu1 %v474_v14  ;;  %635 = vperm.xlu1 %1239, %v1191_v17  }
  0x1b   : > { %582 = vperm.xlu2 %1240, %v579_v26  }
  0x1e   : > { %1188 = vmatmul.msk.f32.vlgmr.msrb.gmra.mxu0 %vm585_vm1, %v578_v16  ;;  %1189 = vmatmul.msk.f32.vlgmr.msrb.gmra.mxu1 %vm585_vm1, %v578_v16 }
  0x1f   : > { %1192 = vmatmul.msk.f32.vlgmr.msrb.gmra.mxu2 %vm585_vm1, %v1190_v15  ;;  %1193 = vmatmul.msk.f32.vlgmr.msrb.gmra.mxu3 %vm585_vm1, %v1190_v15 }
  0x20   : > { %983 = vperm.xlu0 %1238, %v980_v12  }
  0x22   : > { %886 = vperm.xlu1 %1239, %v1213_v18  }
  0x23   : > { %787 = vperm.xlu2 %1240, %v784_v35  }
  0x7f   : > { %v480_v19 = vpop.permute.xlu0 %479 }
  0x8a   : > { %v533_v25 = vpop.permute.xlu0 %532 }
  0x8c   : > { %v636_v11 = vpop.permute.xlu1 %635 }
  0x93   : > { %v503_v20 = vpop.f32.mrf.mxu0  ;;  %v523_v21 = vpop.f32.mrf.mxu1 }
  0x94   : > { %v504_v22 = vadd.f32 %v503_v20, %v480_v19  ;;  %v524_v23 = vadd.f32 %v523_v21, %v480_v19  ;;  %v887_v18 = vpop.permute.xlu1 %886 }
  0x96   : > { %1199 = vmatpush.msk.msra.mxu2 %vm688_vm2, %v504_v22  ;;  %1201 = vmatpush.msk.msra.mxu3 %vm688_vm2, %v524_v23 }
  0x97   : > { %1200 = vmatmul.msk.f32.vlgmr.msra.gmra.mxu2 %vm684_vm3, %v681_v24  ;;  %1202 = vmatmul.msk.f32.vlgmr.msra.gmra.mxu3 %vm684_vm3, %v681_v24 }
  0x98   : > { %1209 = vmatpush.msk.msrb.mxu2 %vm688_vm2, %v504_v22  ;;  %1211 = vmatpush.msk.msrb.mxu3 %vm688_vm2, %v524_v23 }
  0x9a   : > { %v555_v27 = vpop.f32.mrf.mxu2  ;;  %v575_v28 = vpop.f32.mrf.mxu3 }
  0x9b   : > { %v556_v29 = vadd.f32 %v555_v27, %v533_v25  ;;  %v576_v30 = vadd.f32 %v575_v28, %v533_v25  ;;  %v606_v5 = vpop.f32.mrf.mxu0  ;;  %v626_v6 = vpop.f32.mrf.mxu1 }
  0x9c   : > { %v583_v27 = vpop.permute.xlu2 %582 }
  0x9d   : > { %v1214_v32 = vmul.f32 -1.442695, %v556_v29  ;;  %v1215_v33 = vmul.f32 -1.442695, %v576_v30  ;;  %1195 = vmatpush.msk.msra.mxu0 %vm688_vm2, %v556_v29  ;;  %1197 = vmatpush.msk.msra.mxu1 %vm688_vm2, %v576_v30 }
  0x9e   : > { %1196 = vmatmul.msk.f32.vlgmr.msra.gmra.mxu0 %vm684_vm3, %v1194_v31  ;;  %1198 = vmatmul.msk.f32.vlgmr.msra.gmra.mxu1 %vm684_vm3, %v1194_v31 }
  0x9f   : > { %1241 = vpow2.f32 %v1214_v32  ;;  %1205 = vmatpush.msk.msrb.mxu0 %vm688_vm2, %v556_v29  ;;  %1207 = vmatpush.msk.msrb.mxu1 %vm688_vm2, %v576_v30 }
  0xa0   : > { %1243 = vpow2.f32 %v1215_v33  ;;  %1210 = vmatmul.msk.f32.vlgmr.msrb.gmra.mxu2 %vm684_vm3, %v1203_v34  ;;  %1212 = vmatmul.msk.f32.vlgmr.msrb.gmra.mxu3 %vm684_vm3, %v1203_v34 }
  0xa2   : > { %v658_v3 = vpop.f32.mrf.mxu2  ;;  %v678_v4 = vpop.f32.mrf.mxu3 }
  0xa3   : > { %v659_v19 = vadd.f32 %v658_v3, %v636_v11  ;;  %v679_v20 = vadd.f32 %v678_v4, %v636_v11  ;;  %v984_v3 = vpop.permute.xlu0 %983 }
  0xa4   : > { %v788_v32 = vpop.permute.xlu2 %787 }
  0xa5   : > { %v1242_v37 = vpop.eup %1241 }
  0xa6   : > { %v1244_v38 = vpop.eup %1243  ;;  %v903_v39 = vadd.f32 1.0, %v1242_v37  ;;  %1206 = vmatmul.msk.f32.vlgmr.msrb.gmra.mxu0 %vm684_vm3, %v1204_v36  ;;  %1208 = vmatmul.msk.f32.vlgmr.msrb.gmra.mxu1 %vm684_vm3, %v1204_v36  ;;  %v607_v37 = vadd.f32 %v606_v5, %v583_v27  ;;  %v1039_v5 = vld.sshfl [vmem:[#allocation1 + $0x8] sm:$0xff pattern:$0x75316420] }
  0xa7   : > { %v904_v40 = vadd.f32 1.0, %v1244_v38  ;;  %v627_v38 = vadd.f32 %v626_v6, %v583_v27 }
  0xa8   : > { %1245 = vrcp.f32 %v903_v39  ;;  %v916_v48 = vand.u32 2147483648, %v903_v39  ;;  %v914_v50 = vand.u32 2147483647, %v903_v39  ;;  %vm910_vm6 = vweird.f32 %v903_v39 }
  0xa9   : > { %1247 = vrcp.f32 %v904_v40  ;;  %v931_v49 = vand.u32 2147483648, %v904_v40  ;;  %v929_v52 = vand.u32 2147483647, %v904_v40  ;;  %vm925_vm8 = vweird.f32 %v904_v40 }
  0xaa   : > { %1249 = vtanh.f32 %v524_v23  ;;  %v917_v56 = vor.u32 1.1754944e-38, %v916_v48  ;;  %vm915_vm10 = vcmp.eq.f32.partialorder %v914_v50, 8.507059e+37 }
  0xab   : > { %1251 = vtanh.f32 %v504_v22  ;;  %v932_v57 = vor.u32 1.1754944e-38, %v931_v49  ;;  %vm930_vm11 = vcmp.eq.f32.partialorder %v929_v52, 8.507059e+37 }
  0xae   : > { %v1246_v41 = vpop.eup %1245 }
  0xaf   : > { %v1248_v42 = vpop.eup %1247  ;;  %v906_v43 = vmul.f32 %v1246_v41, %v903_v39  ;;  %vm911_vm4 = vweird.f32 %v1246_v41 }
  0xb0   : > { %v921_v44 = vmul.f32 %v1248_v42, %v904_v40  ;;  %vm926_vm5 = vweird.f32 %v1248_v42  ;;  %vm912_vm7 = vmor %vm910_vm6, %vm911_vm4  ;;  %v1250_v58 = vpop.eup %1249 }
  0xb1   : > { %v907_v45 = vsub.f32 1.0, %v906_v43  ;;  %vm927_vm9 = vmor %vm925_vm8, %vm926_vm5  ;;  %v1252_v63 = vpop.eup %1251 }
  0xb2   : > { %v922_v46 = vsub.f32 1.0, %v921_v44 }
  0xb3   : > { %v908_v47 = vmul.f32 %v1246_v41, %v907_v45 }
  0xb4   : > { %v923_v51 = vmul.f32 %v1248_v42, %v922_v46 }
  0xb5   : > { %v909_v53 = vadd.f32 %v1246_v41, %v908_v47 }
  0xb6   : > { %v924_v54 = vadd.f32 %v1248_v42, %v923_v51 }
  0xb7   : > { %v913_v55 = vsel %vm912_vm7, %v1246_v41, %v909_v53 }
  0xb8   : > { %v928_v59 = vsel %vm927_vm9, %v1248_v42, %v924_v54  ;;  %v918_v60 = vsel %vm915_vm10, %v917_v56, %v913_v55 }
  0xb9   : > { %v933_v61 = vsel %vm930_vm11, %v932_v57, %v928_v59  ;;  %v935_v0 = vmul.f32 %v1252_v63, %v918_v60 }
  0xba   : > { %v936_v62 = vmul.f32 %v1250_v58, %v933_v61 }
  0xbc   : > { %v1046_v1 = vrot.slane %v936_v62, 4 }
  0xbe   : > { %v1047_v2 = vsel %vm688_vm2, %v935_v0, %v1046_v1  ;;  %v979_v0 = vld [vmem:[%s1454_s9] sm:$0xf] }
  0xbf   : > { %1049 = vst [vmem:[%s461_s17] sm:$0xff] %v1047_v2 }
 0x11a   : > { %v761_v7 = vpop.f32.mrf.mxu2  ;;  %v781_v8 = vpop.f32.mrf.mxu3 }
 0x11b   : > { %v712_v9 = vpop.f32.mrf.mxu0  ;;  %v732_v10 = vpop.f32.mrf.mxu1 }
 0x11c   : > { %v762_v29 = vadd.f32 %v761_v7, %v712_v9  ;;  %v782_v31 = vadd.f32 %v781_v8, %v732_v10  ;;  %v1038_v8 = vld.sshfl [vmem:[#allocation1] sm:$0xff pattern:$0x75316420] }
 0x11e   : > { %v790_v35 = vadd.f32 %v788_v32, %v762_v29  ;;  %v791_v36 = vadd.f32 %v788_v32, %v782_v31 }
 0x120   : > { %v891_v39 = vadd.f32 %v790_v35, %v607_v37  ;;  %v892_v41 = vadd.f32 %v791_v36, %v627_v38 }
 0x123   : > { %v816_v12 = vpop.f32.mrf.mxu0  ;;  %v836_v13 = vpop.f32.mrf.mxu1 }
 0x124   : > { %v859_v14 = vpop.f32.mrf.mxu2  ;;  %v879_v15 = vpop.f32.mrf.mxu3 }
 0x125   : > { %v860_v16 = vadd.f32 %v859_v14, %v816_v12  ;;  %v880_v17 = vadd.f32 %v879_v15, %v836_v13 }
 0x127   : > { %v889_v21 = vadd.f32 %v887_v18, %v860_v16  ;;  %v890_v22 = vadd.f32 %v887_v18, %v880_v17 }
 0x129   : > { %v893_v23 = vadd.f32 %v889_v21, %v659_v19  ;;  %v894_v24 = vadd.f32 %v890_v22, %v679_v20 }
 0x12b   : > { %v1216_v25 = vmul.f32 -1.442695, %v893_v23  ;;  %v1217_v26 = vmul.f32 -1.442695, %v894_v24 }
 0x12d   : > { %1253 = vpow2.f32 %v1216_v25 }
 0x12e   : > { %1255 = vpow2.f32 %v1217_v26 }
 0x133   : > { %v1254_v28 = vpop.eup %1253 }
 0x134   : > { %v1256_v30 = vpop.eup %1255  ;;  %v945_v33 = vadd.f32 1.0, %v1254_v28 }
 0x135   : > { %v946_v34 = vadd.f32 1.0, %v1256_v30 }
 0x136   : > { %1257 = vrcp.f32 %v945_v33  ;;  %v958_v47 = vand.u32 2147483648, %v945_v33  ;;  %v956_v49 = vand.u32 2147483647, %v945_v33  ;;  %vm952_vm14 = vweird.f32 %v945_v33 }
 0x137   : > { %1259 = vrcp.f32 %v946_v34  ;;  %v973_v50 = vand.u32 2147483648, %v946_v34  ;;  %v971_v52 = vand.u32 2147483647, %v946_v34  ;;  %vm967_vm0 = vweird.f32 %v946_v34 }
 0x138   : > { %1261 = vtanh.f32 %v891_v39  ;;  %v959_v54 = vor.u32 1.1754944e-38, %v958_v47  ;;  %vm957_vm1 = vcmp.eq.f32.partialorder %v956_v49, 8.507059e+37 }
 0x139   : > { %1263 = vtanh.f32 %v892_v41  ;;  %v974_v58 = vor.u32 1.1754944e-38, %v973_v50  ;;  %vm972_vm5 = vcmp.eq.f32.partialorder %v971_v52, 8.507059e+37 }
 0x13c   : > { %v1258_v40 = vpop.eup %1257 }
 0x13d   : > { %v1260_v42 = vpop.eup %1259  ;;  %v948_v43 = vmul.f32 %v1258_v40, %v945_v33  ;;  %vm953_vm12 = vweird.f32 %v1258_v40 }
 0x13e   : > { %v963_v44 = vmul.f32 %v1260_v42, %v946_v34  ;;  %vm968_vm13 = vweird.f32 %v1260_v42  ;;  %vm954_vm15 = vmor %vm952_vm14, %vm953_vm12  ;;  %v1262_v56 = vpop.eup %1261 }
 0x13f   : > { %v949_v45 = vsub.f32 1.0, %v948_v43  ;;  %vm969_vm4 = vmor %vm967_vm0, %vm968_vm13  ;;  %v1264_v59 = vpop.eup %1263 }
 0x140   : > { %v964_v46 = vsub.f32 1.0, %v963_v44 }
 0x141   : > { %v950_v48 = vmul.f32 %v1258_v40, %v949_v45 }
 0x142   : > { %v965_v51 = vmul.f32 %v1260_v42, %v964_v46 }
 0x143   : > { %v951_v53 = vadd.f32 %v1258_v40, %v950_v48 }
 0x144   : > { %v966_v55 = vadd.f32 %v1260_v42, %v965_v51 }
 0x145   : > { %v955_v57 = vsel %vm954_vm15, %v1258_v40, %v951_v53 }
 0x146   : > { %v960_v60 = vsel %vm957_vm1, %v959_v54, %v955_v57  ;;  %v970_v61 = vsel %vm969_vm4, %v1260_v42, %v966_v55 }
 0x147   : > { %v977_v62 = vmul.f32 %v1262_v56, %v960_v60  ;;  %v975_v63 = vsel %vm972_vm5, %v974_v58, %v970_v61 }
 0x148   : > { %v978_v1 = vmul.f32 %v1264_v59, %v975_v63 }
 0x149   : > { %1218 = vmatpush.msk.msra.mxu0 %vm688_vm2, %v977_v62 }
 0x14a   : > { %1220 = vmatpush.msk.msra.mxu1 %vm688_vm2, %v978_v1  ;;  %1219 = vmatmul.msk.f32.vlgmr.msra.gmra.mxu0 %vm684_vm3, %v979_v0 }
 0x14b   : > { %1221 = vmatmul.msk.f32.vlgmr.msra.gmra.mxu1 %vm684_vm3, %v979_v0 }
 0x1c7   : > { %v1012_v2 = vpop.f32.mrf.mxu0 }
 0x1c8   : > { %v1032_v4 = vpop.f32.mrf.mxu1  ;;  %v1013_v6 = vadd.f32 %v1012_v2, %v984_v3 }
 0x1c9   : > { %v1033_v7 = vadd.f32 %v1032_v4, %v984_v3 }
 0x1ca   : > { %v1042_v10 = vadd.f32 %v1038_v8, %v1013_v6 }
 0x1cb   : > { %v1043_v9 = vadd.f32 %v1039_v5, %v1033_v7 }
 0x1cd   : > { %v1052_v11 = vrot.slane %v1043_v9, 4 }
 0x1cf   : > { %v1053_v12 = vsel %vm688_vm2, %v1042_v10, %v1052_v11 }
 0x1d0   : > { %1055 = vst [vmem:[%s466_s24] sm:$0xff] %v1053_v12 }
 0x1d1 PF: > { %s23_s21 = sadd.s32 1, %s1271_s21  }
 0x1d2   : > { %p20_p4 = scmp.ge.s32.totalorder %s23_s21, 4  }
 0x1d4   :  { %22 = sbr.rel (!%p20_p4) target bundleno = 1 (0x1), region = 120 }

</bundles_post_ra>
